<compile_context>
chip_gen: v7x
topology: tpu7x:2x2x1
jax: 0.10.0
libtpu: 0.0.40
codegen_flags: <defaults>
</compile_context>

<pallas_src>
import math
import functools

import jax
import jax.numpy as jnp
from jax.experimental import pallas as pl
from jax.experimental.pallas import tpu as pltpu


# ----------------------------------------------------------------------------- kernel


def _arcmargin_kernel(lab_ref, x_ref, wt_ref, inv_x_ref, inv_w_ref, out_ref, *,
                      s, s_cos_m, s_sin_m, th, s_mm, multi_task, blk_n, mxu_dtype):
    # Normalize the x rows in f32 before any cast: (tb, in) * (tb, 1).
    xn = x_ref[...] * inv_x_ref[...]
    w = wt_ref[...]                                   # (in, tn)

    if mxu_dtype is not None:
        dot = jnp.dot(xn.astype(mxu_dtype), w.astype(mxu_dtype),
                      preferred_element_type=jnp.float32)
    else:
        dot = jnp.dot(xn, w, preferred_element_type=jnp.float32)

    # Only the column-norm scale remains on the (tb, tn) tile.
    cosine = dot * inv_w_ref[...]                     # (tb, tn)

    # Arc-margin epilogue with s folded into the constants.
    sine = jnp.sqrt(jnp.maximum(1.0 - cosine * cosine, 0.0))   # clamp avoids NaN
    cs = cosine * s                                   # s * cosine
    phi_s = cosine * s_cos_m - sine * s_sin_m         # s * phi
    phi_s = jnp.where(cosine > th, phi_s, cs - s_mm)  # s * (cosine - mm)

    if multi_task:
        # lab_ref is the pre-built multi-hot mask tile (tb, tn) int8.
        hit = lab_ref[...] != 0
    else:
        # lab_ref is the (tb, 1) int32 class-index tile; compare against the
        # global column index of this out tile.
        col0 = pl.program_id(1) * blk_n
        out_idx = col0 + jax.lax.broadcasted_iota(jnp.int32, cosine.shape, 1)
        hit = out_idx == lab_ref[...]

    out_ref[...] = jnp.where(hit, phi_s, cs).astype(out_ref.dtype)


# ----------------------------------------------------------------------------- tiling

_BUFFER_BUDGET = 40 * 1024 * 1024   # pipeline-buffer budget; safe on v7x (64 MiB VMEM)


def _footprint_bytes(tb, tn, in_features, multi_task):
    f = 0
    f += 2 * tb * in_features * 4                  # x tile (double-buffered, f32)
    f += 2 * in_features * tn * 4                  # W^T tile (f32, streamed)
    f += 2 * tb * tn * 4                           # out tile (f32)
    if multi_task:
        f += 2 * tb * tn                           # int8 mask tile
    f += 2 * (max(tb, 8) * 128 + 8 * max(tn, 128)) * 4   # inv_x / inv_w (padded)
    # headroom for in-kernel temporaries ((tb,tn) f32 intermediates + bf16 casts)
    f += 4 * tb * tn * 4 + (tb * in_features + in_features * tn) * 2
    return f


def _choose_tb(B, in_features, multi_task):
    # Batch tile as large as possible (ideally B) so W^T streams from HBM once.
    cands = [B] + [c for c in (4096, 2048, 1024, 512, 256, 128, 64, 32, 16, 8)
                   if c < B and B % c == 0]
    if multi_task:
        # int8 mask tile wants a second-minor dim that is a multiple of 32
        # (or the full batch extent, which is always legal).
        cands = [c for c in cands if c == B or c % 32 == 0] or [B]
    tb = cands[-1]
    for c in cands:
        if 2 * c * in_features * 4 <= _BUFFER_BUDGET // 3:
            tb = c
            break
    return tb


def _choose_tn(B, tb, in_features, out_features, multi_task):
    cands = [c for c in (2048, 1024, 512, 256, 128)
             if c <= out_features and out_features % c == 0]
    fits = [c for c in cands
            if _footprint_bytes(tb, c, in_features, multi_task) <= _BUFFER_BUDGET]
    if not fits:
        return out_features            # always-legal full-extent fallback
    if B // tb == 1:
        # Batch axis collapses to one grid step: keep >= 2 out-tiles so both
        # v7x TensorCores get work under ("parallel", "parallel").
        multi_j = [c for c in fits if out_features // c >= 2]
        if multi_j:
            return multi_j[0]
    return fits[0]


def _vmem_limit_bytes(footprint):
    # Headroom above the estimate, but stay well below v7x's 64 MiB physical.
    return int(min(max(int(footprint * 1.5) + (4 << 20), 32 << 20), 48 << 20))


# ----------------------------------------------------------------------------- wrapper


def arc_margin_product(x, weight, label, *, s=30.0, m=0.5, multi_task=False,
                       mxu_dtype=jnp.bfloat16):
    """Pallas implementation of ArcMarginProduct.forward."""
    B, in_features = x.shape
    out_features = weight.shape[0]

    cos_m = math.cos(m)
    sin_m = math.sin(m)
    th = math.cos(math.pi - m)
    mm = math.sin(math.pi - m) * m

    eps2 = 1e-12 * 1e-12   # F.normalize eps, applied to the sum of squares

    # One-time (one-pass) wrapper work: lane-dense W^T and the two norm vectors.
    wt = weight.T                                                   # (in, out)
    inv_x = jax.lax.rsqrt(
        jnp.maximum(jnp.sum(x * x, axis=1, keepdims=True), eps2))   # (B, 1)
    inv_w = jax.lax.rsqrt(
        jnp.maximum(jnp.sum(weight * weight, axis=1), eps2)
    ).reshape(1, out_features)                                      # (1, out)

    tb = _choose_tb(B, in_features, multi_task)
    tn = _choose_tn(B, tb, in_features, out_features, multi_task)
    grid = (B // tb, out_features // tn)

    if multi_task:
        # Same semantics as one_hot.scatter_(1, label.view(-1, out), 1): build
        # the multi-hot mask once in plain JAX, stream it as int8.
        lab = label.reshape(B, out_features).astype(jnp.int32)
        lab_arg = jnp.zeros((B, out_features), jnp.int8).at[
            jnp.arange(B)[:, None], lab].set(jnp.int8(1))
        lab_spec = pl.BlockSpec((tb, tn), lambda i, j: (i, j))
    else:
        lab_arg = label.reshape(B, 1).astype(jnp.int32)
        lab_spec = pl.BlockSpec((tb, 1), lambda i, j: (i, 0))

    kernel = functools.partial(
        _arcmargin_kernel,
        s=s, s_cos_m=s * cos_m, s_sin_m=s * sin_m, th=th, s_mm=s * mm,
        multi_task=multi_task, blk_n=tn, mxu_dtype=mxu_dtype)

    return pl.pallas_call(
        kernel,
        out_shape=jax.ShapeDtypeStruct((B, out_features), jnp.float32),
        grid_spec=pltpu.PrefetchScalarGridSpec(
            num_scalar_prefetch=0,
            grid=grid,
            in_specs=[
                lab_spec,                                              # label / mask
                pl.BlockSpec((tb, in_features), lambda i, j: (i, 0)),  # x (resident over j)
                pl.BlockSpec((in_features, tn), lambda i, j: (0, j)),  # W^T (streamed)
                pl.BlockSpec((tb, 1), lambda i, j: (i, 0)),            # inv_x
                pl.BlockSpec((1, tn), lambda i, j: (0, j)),            # inv_w
            ],
            out_specs=pl.BlockSpec((tb, tn), lambda i, j: (i, j)),
        ),
        compiler_params=pltpu.CompilerParams(
            dimension_semantics=("parallel", "parallel"),
            vmem_limit_bytes=_vmem_limit_bytes(
                _footprint_bytes(tb, tn, in_features, multi_task))),
    )(lab_arg, x, wt, inv_x, inv_w)


# ----------------------------------------------------------------------------- reference / test


def _reference(x, weight, label, *, s=30.0, m=0.5, multi_task=False):
    """Pure-JAX reference mirroring the PyTorch forward."""
    eps = 1e-12
    x_n = x / jnp.maximum(jnp.linalg.norm(x, axis=1, keepdims=True), eps)
    w_n = weight / jnp.maximum(jnp.linalg.norm(weight, axis=1, keepdims=True), eps)
    cosine = x_n @ w_n.T
    sine = jnp.sqrt(jnp.maximum(1.0 - cosine ** 2, 0.0))   # same clamp as kernel
    phi = cosine * math.cos(m) - sine * math.sin(m)
    phi = jnp.where(cosine > math.cos(math.pi - m), phi,
                    cosine - math.sin(math.pi - m) * m)
    B, out = cosine.shape
    label_dim = out if multi_task else 1
    lab = label.reshape(B, label_dim).astype(jnp.int32)
    one_hot = jnp.zeros((B, out), jnp.float32).at[
        jnp.arange(B)[:, None], lab].set(1.0)
    result = one_hot * phi + (1.0 - one_hot) * cosine
    return result * s, cosine


def _check(out, ref, cos_ref, m, *, atol, rtol, branch_eps):
    # Entries whose cosine sits on the cos(pi-m) branch boundary can take a
    # different branch under dot-product rounding; exclude them.
    th = math.cos(math.pi - m)
    ok = jnp.isclose(out, ref, atol=atol, rtol=rtol)
    near_branch = jnp.abs(cos_ref - th) < branch_eps
    assert bool(jnp.all(ok | near_branch)), "mismatch vs reference"


if __name__ == "__main__":
    key = jax.random.PRNGKey(0)
    k_x, k_w, k_l, k_lm = jax.random.split(key, 4)

    B = 32
    in_features = 128
    out_features = 1024   # 2+ out-tiles -> exercises the streamed W^T path
    s_, m_ = 30.0, 0.5

    # xavier_uniform_ init for weight (out_features, in_features)
    bound = math.sqrt(6.0 / (in_features + out_features))
    weight = jax.random.uniform(k_w, (out_features, in_features),
                                dtype=jnp.float32, minval=-bound, maxval=bound)
    x = jax.random.normal(k_x, (B, in_features), dtype=jnp.float32)

    # --- single-task ---
    label = jax.random.randint(k_l, (B,), 0, out_features, dtype=jnp.int32)
    ref, cos_ref = _reference(x, weight, label, s=s_, m=m_, multi_task=False)

    # f32 MXU path (tight tolerance)
    out_f32 = jax.block_until_ready(
        arc_margin_product(x, weight, label, s=s_, m=m_, multi_task=False,
                           mxu_dtype=None))
    assert out_f32.shape == (B, out_features)
    _check(out_f32, ref, cos_ref, m_, atol=1e-3, rtol=1e-4, branch_eps=1e-5)

    # default bf16 MXU path (loose tolerance for bf16 operand rounding)
    out_bf16 = jax.block_until_ready(
        arc_margin_product(x, weight, label, s=s_, m=m_, multi_task=False))
    _check(out_bf16, ref, cos_ref, m_, atol=0.35, rtol=5e-3, branch_eps=2e-2)

    # --- multi-task (label holds (B, out_features) scatter indices) ---
    label_mt = jax.random.randint(k_lm, (B, out_features), 0, out_features,
                                  dtype=jnp.int32)
    ref_mt, cos_ref_mt = _reference(x, weight, label_mt, s=s_, m=m_,
                                    multi_task=True)

    out_mt_f32 = jax.block_until_ready(
        arc_margin_product(x, weight, label_mt, s=s_, m=m_, multi_task=True,
                           mxu_dtype=None))
    _check(out_mt_f32, ref_mt, cos_ref_mt, m_, atol=1e-3, rtol=1e-4,
           branch_eps=1e-5)

    out_mt_bf16 = jax.block_until_ready(
        arc_margin_product(x, weight, label_mt, s=s_, m=m_, multi_task=True))
    _check(out_mt_bf16, ref_mt, cos_ref_mt, m_, atol=0.35, rtol=5e-3,
           branch_eps=2e-2)

    print("KERNEL_OK")
</pallas_src>

<mosaic_0001>
module attributes {stable_mosaic.version = 11 : i64} {
  func.func @_arcmargin_kernel(%arg0: i32, %arg1: i32, %arg2: memref<32x1xi32, #tpu.memory_space<vmem>>, %arg3: memref<32x128xf32, #tpu.memory_space<vmem>>, %arg4: memref<128x512xf32, #tpu.memory_space<vmem>>, %arg5: memref<32x1xf32, #tpu.memory_space<vmem>>, %arg6: memref<1x512xf32, #tpu.memory_space<vmem>>, %arg7: memref<32x512xf32, #tpu.memory_space<vmem>>) attributes {dimension_semantics = [#tpu.dimension_semantics<parallel>, #tpu.dimension_semantics<parallel>], iteration_bounds = array<i64: 1, 2>, scalar_prefetch = 0 : i64, scratch_operands = 0 : i64, tpu.core_type = #tpu.core_type<tc>, window_params = [{transform_indices = @transform_0, window_bounds = array<i64: 32, 1>}, {transform_indices = @transform_1, window_bounds = array<i64: 32, 128>}, {transform_indices = @transform_2, window_bounds = array<i64: 128, 512>}, {transform_indices = @transform_3, window_bounds = array<i64: 32, 1>}, {transform_indices = @transform_4, window_bounds = array<i64: 1, 512>}, {transform_indices = @transform_5, window_bounds = array<i64: 32, 512>}]} {
    %c0 = arith.constant 0 : index
    %c0_0 = arith.constant 0 : index
    %0 = vector.load %arg3[%c0, %c0_0] : memref<32x128xf32, #tpu.memory_space<vmem>>, vector<32x128xf32>
    %c0_1 = arith.constant 0 : index
    %c0_2 = arith.constant 0 : index
    %1 = vector.load %arg5[%c0_1, %c0_2] : memref<32x1xf32, #tpu.memory_space<vmem>>, vector<32x1xf32>
    %2 = vector.broadcast %1 : vector<32x1xf32> to vector<32x128xf32>
    %3 = arith.mulf %0, %2 : vector<32x128xf32>
    %c0_3 = arith.constant 0 : index
    %c0_4 = arith.constant 0 : index
    %4 = vector.load %arg4[%c0_3, %c0_4] : memref<128x512xf32, #tpu.memory_space<vmem>>, vector<128x512xf32>
    %cst = arith.constant dense<0.000000e+00> : vector<32x512xf32>
    %5 = tpu.matmul %3, %4, %cst {dimension_numbers = #tpu.dot_dimension_numbers<[1], [0], [0], [1], [0, 0, 1, 1], [], []>} : vector<32x128xf32>, vector<128x512xf32>, vector<32x512xf32> -> vector<32x512xf32>
    %c0_5 = arith.constant 0 : index
    %c0_6 = arith.constant 0 : index
    %6 = vector.load %arg6[%c0_5, %c0_6] : memref<1x512xf32, #tpu.memory_space<vmem>>, vector<1x512xf32>
    %7 = vector.broadcast %6 : vector<1x512xf32> to vector<32x512xf32>
    %8 = arith.mulf %5, %7 : vector<32x512xf32>
    %9 = arith.mulf %8, %8 : vector<32x512xf32>
    %cst_7 = arith.constant 1.000000e+00 : f32
    %10 = vector.broadcast %cst_7 : f32 to vector<32x512xf32>
    %11 = arith.subf %10, %9 : vector<32x512xf32>
    %cst_8 = arith.constant 0.000000e+00 : f32
    %12 = vector.broadcast %cst_8 : f32 to vector<32x512xf32>
    %13 = arith.maximumf %11, %12 : vector<32x512xf32>
    %14 = math.sqrt %13 : vector<32x512xf32>
    %cst_9 = arith.constant 3.000000e+01 : f32
    %15 = vector.broadcast %cst_9 : f32 to vector<32x512xf32>
    %16 = arith.mulf %8, %15 : vector<32x512xf32>
    %cst_10 = arith.constant 26.3274765 : f32
    %17 = vector.broadcast %cst_10 : f32 to vector<32x512xf32>
    %18 = arith.mulf %8, %17 : vector<32x512xf32>
    %cst_11 = arith.constant 14.3827658 : f32
    %19 = vector.broadcast %cst_11 : f32 to vector<32x512xf32>
    %20 = arith.mulf %14, %19 : vector<32x512xf32>
    %21 = arith.subf %18, %20 : vector<32x512xf32>
    %cst_12 = arith.constant -0.87758255 : f32
    %22 = vector.broadcast %cst_12 : f32 to vector<32x512xf32>
    %23 = arith.cmpf ogt, %8, %22 : vector<32x512xf32>
    %cst_13 = arith.constant 7.19138288 : f32
    %24 = vector.broadcast %cst_13 : f32 to vector<32x512xf32>
    %25 = arith.subf %16, %24 : vector<32x512xf32>
    %26 = arith.select %23, %21, %25 : vector<32x512xi1>, vector<32x512xf32>
    %c512_i32 = arith.constant 512 : i32
    %27 = arith.muli %arg1, %c512_i32 : i32
    %28 = tpu.iota {dimensions = array<i32: 1>} : vector<32x512xi32>
    %29 = vector.broadcast %27 : i32 to vector<32x512xi32>
    %30 = arith.addi %29, %28 : vector<32x512xi32>
    %c0_14 = arith.constant 0 : index
    %c0_15 = arith.constant 0 : index
    %31 = vector.load %arg2[%c0_14, %c0_15] : memref<32x1xi32, #tpu.memory_space<vmem>>, vector<32x1xi32>
    %32 = vector.broadcast %31 : vector<32x1xi32> to vector<32x512xi32>
    %33 = arith.cmpi eq, %30, %32 : vector<32x512xi32>
    %34 = arith.select %33, %26, %16 : vector<32x512xi1>, vector<32x512xf32>
    %c0_16 = arith.constant 0 : index
    %c0_17 = arith.constant 0 : index
    %35 = vector.load %arg7[%c0_16, %c0_17] : memref<32x512xf32, #tpu.memory_space<vmem>>, vector<32x512xf32>
    tpu.vector_store %arg7[%c0_16, %c0_17], %34 {strides = array<i32>} : memref<32x512xf32, #tpu.memory_space<vmem>>, vector<32x512xf32>,
    return
  }
  func.func @transform_0(%arg0: i32, %arg1: i32) -> (i32, i32) {
    %c0_i32 = arith.constant 0 : i32
    %c0_i32_0 = arith.constant 0 : i32
    return %arg0, %c0_i32 : i32, i32
  }
  func.func @transform_1(%arg0: i32, %arg1: i32) -> (i32, i32) {
    %c0_i32 = arith.constant 0 : i32
    %c0_i32_0 = arith.constant 0 : i32
    return %arg0, %c0_i32 : i32, i32
  }
  func.func @transform_2(%arg0: i32, %arg1: i32) -> (i32, i32) {
    %c0_i32 = arith.constant 0 : i32
    %c0_i32_0 = arith.constant 0 : i32
    return %c0_i32, %arg1 : i32, i32
  }
  func.func @transform_3(%arg0: i32, %arg1: i32) -> (i32, i32) {
    %c0_i32 = arith.constant 0 : i32
    %c0_i32_0 = arith.constant 0 : i32
    return %arg0, %c0_i32 : i32, i32
  }
  func.func @transform_4(%arg0: i32, %arg1: i32) -> (i32, i32) {
    %c0_i32 = arith.constant 0 : i32
    %c0_i32_0 = arith.constant 0 : i32
    return %c0_i32, %arg1 : i32, i32
  }
  func.func @transform_5(%arg0: i32, %arg1: i32) -> (i32, i32) {
    %c0_i32 = arith.constant 0 : i32
    return %arg0, %arg1 : i32, i32
  }
}

</mosaic_0001>

<bundles_post_ra>
// kernel: tpu_custom_call.1
= control target key start
LH: loop header
LB: loop body
LE: loop exit
PB: predicated region body
PF: predicated region fallthrough
CT: control target
= control target key end

     0   :  { %10 = vsyncpa [#allocation3], 0  ;;  %s2279_s0 = inlined_call_operand.vmem [shape: s32[32,1], index: 0, kind: input, shape index: {}]   ;;  %s2280_s1 = inlined_call_operand.vmem [shape: f32[32,128], index: 1, kind: input, shape index: {}]   ;;  %s2281_s2 = inlined_call_operand.hbm [shape: f32[128,1024], index: 2, kind: input, shape index: {}]   ;;  %s2282_s3 = inlined_call_operand.vmem [shape: f32[32,1], index: 3, kind: input, shape index: {}]   ;;  %s2283_s4 = inlined_call_operand.vmem [shape: f32[1,1024], index: 4, kind: input, shape index: {}]   ;;  %s2284_s5 = inlined_call_operand.hbm [shape: f32[32,1024], index: 5, kind: output, shape index: {}]  }
   0x1   :  { %12 = vsyncpa [#allocation3 + $0x1], 0 }
   0x2   :  { %13 = vsyncpa [#allocation4], 0 }
   0x3   :  { %15 = vsyncpa [#allocation4 + $0x1], 0  ;;  %s1519_s18 = smov 0   ;;  %s1521_s19 = smov 0  }
   0x4   :  { %s1523_s20 = smov 0   ;;  %s1525_s21 = smov 0  }
   0x5   :  { %s1527_s22 = smov 0   ;;  %s1529_s23 = smov 0  }
   0x6 LB: > { %s1159_s24 = sadd.s32 4294967295, %s1477_s23   ;;  %s1160_s25 = sadd.s32 4294967294, %s1477_s23   ;;  %s1477_s23 = sphi %s1529_s23, %s21_s23   ;;  %s1473_s22 = sphi %s1527_s22, %s2298_s22   ;;  %s1469_s21 = sphi %s1525_s21, %s2297_s21   ;;  %s1465_s20 = sphi %s1523_s20, %s2296_s20   ;;  %s1461_s19 = sphi %s1521_s19, %s2295_s19   ;;  %s1457_s18 = sphi %s1519_s18, %s2294_s18  }
   0x7   : > { %s30_s26 = sadd.s32 1, %s1473_s22  ;;  %s92_s27 = sadd.s32 1, %s1465_s20 }
   0x8   : > { %p31_p0 = scmp.ge.s32.totalorder %s30_s26, 2  ;;  %p99_p1 = scmp.ne.s32.totalorder %s1465_s20, %s1461_s19 }
   0x9   : > { %p100_p2 = scmp.eq.s32.totalorder %s1477_s23, 0  ;;  %p105_p3 = scmp.ne.s32.totalorder %s1461_s19, %s1457_s18 }
   0xa   : > { %s2300_s26 = smov (%p31_p0, %s30_s26), 0  ;;  %p106_p5 = scmp.eq.s32.totalorder %s1159_s24, 0 }
   0xb   : > { %p1560_p4 = por %p100_p2, %p99_p1  ;;  %s89_s29 = ssub.s32 %s1473_s22, %s2300_s26 }
   0xc   : > { %p183_p6 = scmp.eq.s32.totalorder %s1159_s24, 1  ;;  %p90_p7 = scmp.eq.s32.totalorder %s89_s29, 0 }
   0xd   : > { %p1566_p8 = por %p106_p5, %p105_p3  ;;  %p189_p10 = scmp.eq.s32.totalorder %s1160_s25, 1 }
   0xe   : > { %p1570_p9 = por %p183_p6, %p99_p1  ;;  %p1273_p13 = scmp.lt.s32.totalorder %s1477_s23, 2 }
   0xf   : > { %s1575_s7 = scalar_select %p90_p7, %s1465_s20, %s92_s27  }
  0x10   : > { %s2288_s6 = scalar_select %p1570_p9, 1, 0 }
  0x11   : > { %p1577_p11 = por %p189_p10, %p105_p3  ;;  %s236_s9 = sand.u32 1, %s1465_s20  }
  0x12   : > { %s1166_s10 = sshll.u32 %s236_s9, 9  ;;  %s1195_s11 = sshll.u32 %s1473_s22, 9 }
  0x13   : > { %s2289_s8 = scalar_select %p1577_p11, 1, 0 }
  0x14   : > { %s1588_s14 = scalar_lea.hbm %s2281_s2, %s1195_s11  ;;  %s240_s15 = scalar_lea.vmem [#allocation2], %s1166_s10 }
  0x15   : > { %s247_s16 = sshll.u32 %s240_s15, 4  ;;  %p1594_p0 = pnand %p1273_p13, %p1560_p4  ;;  %s1590_s16 = int_to_ptr.vmem [resolvable:$true] %s247_s16 }
  0x16   : > { %s1598_s24 = scalar_lea.sflag [#allocation3], %s236_s9  ;;  %s1365_s25 = scalar_lea.hbm %s1588_s14, 8192 }
  0x17   : > { %p1366_p1 = scmp.ne.s32.totalorder %s1588_s14, %s1365_s25  ;;  %p1367_p2 = pneg %p1594_p0 }
  0x18   : > { %s1370_s28 = scalar_lea.hbm %s2281_s2, 16384  ;;  %p1371_p4 = scmp.lt.u32.totalorder %s1588_s14, %s2281_s2 }
  0x19   : > { %p1368_p3 = pnand %p1367_p2, %p1366_p1  ;;  %p1372_p6 = scmp.lt.u32.totalorder %s1370_s28, %s1365_s25 }
  0x1a   : > { %p1374_p10 = scmp.lt.u32.totalorder %s1365_s25, %s1588_s14 }
  0x1b   : > { %p1369_p5 = pneg %p1368_p3  ;;  %p1373_p7 = por %p1372_p6, %p1371_p4 }
  0x1d   : > { %p1375_p13 = por %p1374_p10, %p1373_p7 }
  0x1f   : > { %p1376_p12 = pnand %p1375_p13, %p1369_p5 }
  0x21   : > { %1379 = shalt.err (!%p1376_p12)
}
  0x22   : > { %s1380_s9 = scalar_lea.vmem %s1590_s16, 8192  ;;  %s1479_s12 = smov [#allocation2]  }
  0x23   : > { %p1381_p1 = scmp.ne.s32.totalorder %s1590_s16, %s1380_s9  ;;  %s1385_s13 = sshll.u32 %s1479_s12, 4  ;;  %s1386_s13 = int_to_ptr.vmem [resolvable:$false] %s1385_s13 }
  0x24   : > { %s1387_s15 = scalar_lea.vmem %s1386_s13, 16384  ;;  %p1388_p9 = scmp.lt.s32.totalorder %s1590_s16, %s1386_s13 }
  0x25   : > { %p1383_p3 = pnand %p1381_p1, %p1367_p2  ;;  %p1389_p4 = scmp.lt.s32.totalorder %s1387_s15, %s1380_s9 }
  0x27   : > { %p1384_p11 = pneg %p1383_p3  ;;  %p1390_p6 = por %p1389_p4, %p1388_p9 }
  0x29   : > { %p1391_p7 = pnand %p1390_p6, %p1384_p11 }
  0x2b   : > { %1394 = shalt.err (!%p1391_p7)
}
  0x2c   : > { %s1480_s25 = smov 1024   ;;  %s1481_s27 = smov 512  }
  0x2d   : > { %s1482_s29 = smov 32   ;;  %p1169_p12 = scmp.ge.s32.totalorder %s1477_s23, 1 }
  0x2e   : > { %1268 = dma.hbm_to_vmem [thread:$0]  (!%p1594_p0), %s1588_s14, 8192, %s1590_s16, %s1598_s24, %s1480_s25, %s1481_s27, %s1482_s29  }
  0x2f   : > { %p263_p2 = scmp.lt.s32.totalorder %s1477_s23, 3 }
  0x31   : > { %p264_p5 = pnand %p1169_p12, %p263_p2 }
  0x32   : > { %s1629_s28 = sand.u32 (!%p264_p5), 1, %s1461_s19  }
  0x33   : > { %267 = sbr.rel (%p264_p5) target bundleno = 508 (0x1fc), region = 40  ;;  %s1170_s10 = sshll.u32 (!%p264_p5), %s1629_s28, 9 }
  0x34   : > { %s270_s11 = scalar_lea.sflag (!%p264_p5), [#allocation3], %s1629_s28  ;;  %s1633_s9 = scalar_lea.vmem (!%p264_p5), [#allocation2], %s1170_s10 }
  0x3a   : > { %1448 = dma.done.wait (%p1566_p8), %s270_s11, 8192  }
  0x3b   : > { %1450 = vsyncadd (%p1566_p8), %s270_s11, 4294959104  ;;  %v1483_v0 = vmov 0   ;;  %v351_v1 = vld [vmem:[%s2282_s3 + $0x10] sm:$0xff]  ;;  %v349_v2 = vld [vmem:[%s2282_s3] sm:$0xff]  ;;  %v1484_v6 = vmov 0.0   ;;  %s1172_s29 = sshll.u32 %s1469_s21, 2 }
  0x3c   : > { %1332 = vset.pattern.permute.xlu1 %v1483_v0  ;;  %1331 = vset.pattern.permute.xlu0 %v1483_v0  ;;  %v352_v3 = vld [vmem:[%s2282_s3 + $0x18] sm:$0xff]  ;;  %v350_v4 = vld [vmem:[%s2282_s3 + $0x8] sm:$0xff]  ;;  %v940_v11 = vld [vmem:[%s2279_s0] sm:$0xff]  ;;  %p339_p8 = scmp.lt.s32.totalorder %s1172_s29, 7  ;;  %s1189_s16 = sshll.u32 %s1469_s21, 9 }
  0x3d   : > { %365 = vperm.xlu1 %1332, %v351_v1   ;;  %355 = vperm.xlu0 %1331, %v349_v2   ;;  %v378_v5 = vld [vmem:[%s1633_s9 + $0x8] sm:$0xff]  ;;  %v380_v8 = vld [vmem:[%s1633_s9 + $0x18] sm:$0xff]  ;;  %v377_v14 = vld [vmem:[%s1633_s9] sm:$0xff]  ;;  %s1171_s17 = sshll.u32 %s1629_s28, 7  ;;  %s1005_s21 = scalar_lea.sflag [#allocation4], %s1629_s28 }
  0x3e   : > { %505 = vmatprep.mubr.f32.mxu0 %v1484_v6  ;;  %594 = vmatprep.mubr.f32.mxu1 %v1484_v6  ;;  %v382_v7 = vld [vmem:[%s1633_s9 + $0x28] sm:$0xff]  ;;  %v384_v9 = vld [vmem:[%s1633_s9 + $0x38] sm:$0xff]  ;;  %v381_v15 = vld [vmem:[%s1633_s9 + $0x20] sm:$0xff]  ;;  %s2302_s29 = smov (!%p339_p8, %s1172_s29), 7  ;;  %s1969_s24 = scalar_lea.vmem [#allocation5], %s1171_s17 }
  0x3f   : > { %v941_v10 = vld [vmem:[%s2279_s0 + $0x8] sm:$0xff]  ;;  %v1197_v12 = vpack.c.bf16 %v382_v7, %v378_v5  ;;  %v1229_v13 = vpack.c.bf16 %v384_v9, %v380_v8  ;;  %v379_v16 = vld [vmem:[%s1633_s9 + $0x10] sm:$0xff]  ;;  %v1199_v17 = vpack.c.bf16 %v381_v15, %v377_v14  ;;  %v388_v23 = vld [vmem:[%s1633_s9 + $0x58] sm:$0xff]  ;;  %s341_s14 = scalar_lea.vmem %s2283_s4, %s2302_s29  ;;  %s1021_s30 = sshll.u32 %s1969_s24, 4  ;;  %s2227_s30 = int_to_ptr.vmem [resolvable:$true] %s1021_s30 }
  0x40   : > { %v383_v18 = vld [vmem:[%s1633_s9 + $0x30] sm:$0xff]  ;;  %v386_v19 = vld [vmem:[%s1633_s9 + $0x48] sm:$0xff]  ;;  %v392_v24 = vld [vmem:[%s1633_s9 + $0x78] sm:$0xff]  ;;  %s1395_s15 = scalar_lea.vmem %s2227_s30, 2048  ;;  %p2291_p11 = scmp.ne.s32.totalorder %s2288_s6, 0 }
  0x41   : > { %370 = vperm.xlu1 %1332, %v352_v3   ;;  %360 = vperm.xlu0 %1331, %v350_v4   ;;  %v390_v20 = vld [vmem:[%s1633_s9 + $0x68] sm:$0xff]  ;;  %v1231_v21 = vpack.c.bf16 %v383_v18, %v379_v16  ;;  %v385_v25 = vld [vmem:[%s1633_s9 + $0x40] sm:$0xff]  ;;  %v1233_v26 = vpack.c.bf16 %v392_v24, %v388_v23  ;;  %v387_v28 = vld [vmem:[%s1633_s9 + $0x50] sm:$0xff]  ;;  %p1396_p9 = scmp.ne.s32.totalorder %s2227_s30, %s1395_s15  ;;  %s1485_s25 = smov [#allocation5]  }
  0x42   : > { %1198 = vmatprep.subr.bf16.mxu0 %v1197_v12  ;;  %1230 = vmatprep.subr.bf16.mxu1 %v1229_v13  ;;  %v1201_v22 = vpack.c.bf16 %v390_v20, %v386_v19  ;;  %v389_v27 = vld [vmem:[%s1633_s9 + $0x60] sm:$0xff]  ;;  %v391_v29 = vld [vmem:[%s1633_s9 + $0x70] sm:$0xff]  ;;  %v943_v30 = vld [vmem:[%s2279_s0 + $0x18] sm:$0xff]  ;;  %s1399_s27 = sshll.u32 %s1485_s25, 4  ;;  %s1400_s27 = int_to_ptr.vmem [resolvable:$false] %s1399_s27 }
  0x43   : > { %1200 = vmatpush1.bf16.msra.mxu0 %v1199_v17  ;;  %v942_v31 = vld [vmem:[%s2279_s0 + $0x10] sm:$0xff]  ;;  %1232 = vmatpush1.bf16.msra.mxu1 %v1231_v21  ;;  %v1203_v32 = vpack.c.bf16 %v389_v27, %v385_v25  ;;  %v1235_v33 = vpack.c.bf16 %v391_v29, %v387_v28  ;;  %v394_v34 = vld [vmem:[%s1633_s9 + $0x88] sm:$0xff]  ;;  %v396_v36 = vld [vmem:[%s1633_s9 + $0x98] sm:$0xff]  ;;  %p1397_p0 = pnand %p1396_p9, %p2291_p11  ;;  %s1401_s29 = scalar_lea.vmem %s1400_s27, 4096 }
  0x44   : > { %1202 = vmatprep.subr.bf16.mxu0 %v1201_v22  ;;  %v398_v35 = vld [vmem:[%s1633_s9 + $0xa8] sm:$0xff]  ;;  %v400_v38 = vld [vmem:[%s1633_s9 + $0xb8] sm:$0xff]  ;;  %v393_v39 = vld [vmem:[%s1633_s9 + $0x80] sm:$0xff]  ;;  %1234 = vmatprep.subr.bf16.mxu1 %v1233_v26  ;;  %p1402_p13 = scmp.lt.s32.totalorder %s2227_s30, %s1400_s27  ;;  %p1403_p1 = scmp.lt.s32.totalorder %s1401_s29, %s1395_s15 }
  0x45   : > { %948 = vperm.xlu1 %1332, %v941_v10   ;;  %945 = vperm.xlu0 %1331, %v940_v11   ;;  %v1205_v37 = vpack.c.bf16 %v398_v35, %v394_v34  ;;  %v397_v40 = vld [vmem:[%s1633_s9 + $0xa0] sm:$0xff]  ;;  %v1237_v41 = vpack.c.bf16 %v400_v38, %v396_v36  ;;  %v395_v42 = vld [vmem:[%s1633_s9 + $0x90] sm:$0xff]  ;;  %v402_v44 = vld [vmem:[%s1633_s9 + $0xc8] sm:$0xff]  ;;  %p1398_p10 = pneg %p1397_p0 }
  0x46   : > { %v399_v43 = vld [vmem:[%s1633_s9 + $0xb0] sm:$0xff]  ;;  %v1207_v45 = vpack.c.bf16 %v397_v40, %v393_v39  ;;  %v406_v46 = vld [vmem:[%s1633_s9 + $0xe8] sm:$0xff]  ;;  %v404_v47 = vld [vmem:[%s1633_s9 + $0xd8] sm:$0xff]  ;;  %p1404_p3 = por %p1403_p1, %p1402_p13 }
  0x47   : > { %1204 = vmatpush1.bf16.msra.mxu0 %v1203_v32  ;;  %v408_v48 = vld [vmem:[%s1633_s9 + $0xf8] sm:$0xff]  ;;  %1236 = vmatpush1.bf16.msra.mxu1 %v1235_v33  ;;  %v1239_v49 = vpack.c.bf16 %v399_v43, %v395_v42  ;;  %v1209_v50 = vpack.c.bf16 %v406_v46, %v402_v44  ;;  %v401_v51 = vld [vmem:[%s1633_s9 + $0xc0] sm:$0xff]  ;;  %v403_v53 = vld [vmem:[%s1633_s9 + $0xd0] sm:$0xff] }
  0x48   : > { %1206 = vmatprep.subr.bf16.mxu0 %v1205_v37  ;;  %v405_v52 = vld [vmem:[%s1633_s9 + $0xe0] sm:$0xff]  ;;  %v1241_v54 = vpack.c.bf16 %v408_v48, %v404_v47  ;;  %v407_v55 = vld [vmem:[%s1633_s9 + $0xf0] sm:$0xff]  ;;  %v410_v56 = vld [vmem:[%s1633_s9 + $0x108] sm:$0xff]  ;;  %1238 = vmatprep.subr.bf16.mxu1 %v1237_v41  ;;  %p1405_p4 = pnand %p1404_p3, %p1398_p10 }
  0x49   : > { %954 = vperm.xlu1 %1332, %v943_v30   ;;  %951 = vperm.xlu0 %1331, %v942_v31   ;;  %v414_v57 = vld [vmem:[%s1633_s9 + $0x128] sm:$0xff]  ;;  %v412_v58 = vld [vmem:[%s1633_s9 + $0x118] sm:$0xff]  ;;  %v1211_v60 = vpack.c.bf16 %v405_v52, %v401_v51  ;;  %v1243_v61 = vpack.c.bf16 %v407_v55, %v403_v53  ;;  %v409_v63 = vld [vmem:[%s1633_s9 + $0x100] sm:$0xff]  ;;  %v621_v55 = vlaneseq }
  0x4a   : > { %v416_v59 = vld [vmem:[%s1633_s9 + $0x138] sm:$0xff]  ;;  %v1213_v62 = vpack.c.bf16 %v414_v57, %v410_v56  ;;  %v413_v0 = vld [vmem:[%s1633_s9 + $0x120] sm:$0xff]  ;;  %v411_v1 = vld [vmem:[%s1633_s9 + $0x110] sm:$0xff] }
  0x4b   : > { %1208 = vmatpush1.bf16.msra.mxu0 %v1207_v45  ;;  %1240 = vmatpush1.bf16.msra.mxu1 %v1239_v49  ;;  %v1245_v2 = vpack.c.bf16 %v416_v59, %v412_v58  ;;  %v415_v3 = vld [vmem:[%s1633_s9 + $0x130] sm:$0xff]  ;;  %v418_v4 = vld [vmem:[%s1633_s9 + $0x148] sm:$0xff]  ;;  %v420_v7 = vld [vmem:[%s1633_s9 + $0x158] sm:$0xff]  ;;  %v1215_v9 = vpack.c.bf16 %v413_v0, %v409_v63  ;;  %v622_v56 = vshrl.u32 %v621_v55, 7 }
  0x4c   : > { %1210 = vmatprep.subr.bf16.mxu0 %v1209_v50  ;;  %1242 = vmatprep.subr.bf16.mxu1 %v1241_v54  ;;  %v422_v5 = vld [vmem:[%s1633_s9 + $0x168] sm:$0xff]  ;;  %v424_v8 = vld [vmem:[%s1633_s9 + $0x178] sm:$0xff]  ;;  %v1247_v10 = vpack.c.bf16 %v415_v3, %v411_v1  ;;  %v417_v12 = vld [vmem:[%s1633_s9 + $0x140] sm:$0xff] }
  0x4d   : > { %v1217_v11 = vpack.c.bf16 %v422_v5, %v418_v4  ;;  %v421_v13 = vld [vmem:[%s1633_s9 + $0x160] sm:$0xff]  ;;  %v419_v14 = vld [vmem:[%s1633_s9 + $0x150] sm:$0xff]  ;;  %v1249_v15 = vpack.c.bf16 %v424_v8, %v420_v7  ;;  %v426_v17 = vld [vmem:[%s1633_s9 + $0x188] sm:$0xff]  ;;  %v623_v57 = vsub.s32 0, %v622_v56  ;;  %v631_v58 = vsub.s32 2, %v622_v56 }
  0x4e   : > { %v423_v16 = vld [vmem:[%s1633_s9 + $0x170] sm:$0xff]  ;;  %v430_v18 = vld [vmem:[%s1633_s9 + $0x1a8] sm:$0xff]  ;;  %v428_v19 = vld [vmem:[%s1633_s9 + $0x198] sm:$0xff]  ;;  %v1219_v21 = vpack.c.bf16 %v421_v13, %v417_v12 }
  0x4f   : > { %1212 = vmatpush1.bf16.msra.mxu0 %v1211_v60  ;;  %1244 = vmatpush1.bf16.msra.mxu1 %v1243_v61  ;;  %v432_v20 = vld [vmem:[%s1633_s9 + $0x1b8] sm:$0xff]  ;;  %v1251_v22 = vpack.c.bf16 %v423_v16, %v419_v14  ;;  %v1221_v23 = vpack.c.bf16 %v430_v18, %v426_v17  ;;  %v425_v24 = vld [vmem:[%s1633_s9 + $0x180] sm:$0xff]  ;;  %v427_v26 = vld [vmem:[%s1633_s9 + $0x190] sm:$0xff]  ;;  %v627_v60 = vsub.s32 1, %v622_v56  ;;  %v635_v61 = vsub.s32 3, %v622_v56 }
  0x50   : > { %1214 = vmatprep.subr.bf16.mxu0 %v1213_v62  ;;  %1246 = vmatprep.subr.bf16.mxu1 %v1245_v2  ;;  %v429_v25 = vld [vmem:[%s1633_s9 + $0x1a0] sm:$0xff]  ;;  %v1253_v27 = vpack.c.bf16 %v432_v20, %v428_v19  ;;  %v431_v28 = vld [vmem:[%s1633_s9 + $0x1b0] sm:$0xff]  ;;  %v434_v29 = vld [vmem:[%s1633_s9 + $0x1c8] sm:$0xff] }
  0x51   : > { %v438_v30 = vld [vmem:[%s1633_s9 + $0x1e8] sm:$0xff]  ;;  %v436_v31 = vld [vmem:[%s1633_s9 + $0x1d8] sm:$0xff]  ;;  %v1223_v33 = vpack.c.bf16 %v429_v25, %v425_v24  ;;  %v1255_v34 = vpack.c.bf16 %v431_v28, %v427_v26  ;;  %v433_v36 = vld [vmem:[%s1633_s9 + $0x1c0] sm:$0xff] }
  0x52   : > { %v440_v32 = vld [vmem:[%s1633_s9 + $0x1f8] sm:$0xff]  ;;  %v1225_v35 = vpack.c.bf16 %v438_v30, %v434_v29  ;;  %v437_v37 = vld [vmem:[%s1633_s9 + $0x1e0] sm:$0xff]  ;;  %v435_v39 = vld [vmem:[%s1633_s9 + $0x1d0] sm:$0xff] }
  0x53   : > { %1216 = vmatpush1.bf16.msra.mxu0 %v1215_v9  ;;  %1248 = vmatpush1.bf16.msra.mxu1 %v1247_v10  ;;  %v1257_v38 = vpack.c.bf16 %v440_v32, %v436_v31  ;;  %v439_v40 = vld [vmem:[%s1633_s9 + $0x1f0] sm:$0xff]  ;;  %v1227_v41 = vpack.c.bf16 %v437_v37, %v433_v36  ;;  %v345_v43 = vld [vmem:[%s2280_s1] sm:$0xff]  ;;  %v346_v46 = vld [vmem:[%s2280_s1 + $0x8] sm:$0xff]  ;;  %v931_v10 = vand.u32 127, %v621_v55  ;;  %s2224_s9 = scalar_lea.hbm %s2284_s5, %s1189_s16 }
  0x54   : > { %1218 = vmatprep.subr.bf16.mxu0 %v1217_v11  ;;  %1250 = vmatprep.subr.bf16.mxu1 %v1249_v15  ;;  %v1259_v42 = vpack.c.bf16 %v439_v40, %v435_v39  ;;  %v347_v47 = vld [vmem:[%s2280_s1 + $0x10] sm:$0xff]  ;;  %v348_v52 = vld [vmem:[%s2280_s1 + $0x18] sm:$0xff]  ;;  %v619_v59 = vld [vmem:[%s341_s14] sm:$0xf] }
  0x55   : > { %v1751_v62 = vrot.slane %v619_v59, %v623_v57  ;;  %v1755_v63 = vrot.slane %v619_v59, %v627_v60  ;;  %v1757_v0 = vrot.slane %v619_v59, %v635_v61  ;;  %v933_v25 = vadd.s32 256, %v931_v10 }
  0x56   : > { %v934_v26 = vadd.s32 384, %v931_v10 }
  0x57   : > { %1220 = vmatpush1.bf16.msra.mxu0 %v1219_v21  ;;  %1252 = vmatpush1.bf16.msra.mxu1 %v1251_v22  ;;  %v932_v21 = vadd.s32 128, %v931_v10  ;;  %v935_v22 = vstv %s1189_s16 }
  0x58   : > { %1222 = vmatprep.subr.bf16.mxu0 %v1221_v23  ;;  %1254 = vmatprep.subr.bf16.mxu1 %v1253_v27  ;;  %v1793_v32 = vadd.s32 %v935_v22, %v931_v10  ;;  %v1813_v40 = vadd.s32 %v935_v22, %v933_v25 }
  0x59   : > { %v1804_v36 = vadd.s32 %v935_v22, %v932_v21 }
  0x5b   : > { %1224 = vmatpush1.bf16.msra.mxu0 %v1223_v33  ;;  %1256 = vmatpush1.bf16.msra.mxu1 %v1255_v34 }
  0x5c   : > { %1226 = vmatprep.subr.bf16.mxu0 %v1225_v35  ;;  %1258 = vmatprep.subr.bf16.mxu1 %v1257_v38 }
  0x5f   : > { %1228 = vmatpush1.bf16.msra.mxu0 %v1227_v41  ;;  %1260 = vmatpush1.bf16.msra.mxu1 %v1259_v42  ;;  %v1815_v41 = vadd.s32 %v935_v22, %v934_v26 }
  0xbc   : > { %v356_v44 = vpop.permute.xlu0 %355  ;;  %v366_v50 = vpop.permute.xlu1 %365 }
  0xbd   : > { %v373_v45 = vmul.f32 %v356_v44, %v345_v43  ;;  %v375_v51 = vmul.f32 %v366_v50, %v347_v47 }
  0xbf   : > { %506 = vmatmul.mubr.f32.vlgmr.msra.gmra.mrb[0].mxu0 %v373_v45  ;;  %595 = vmatmul.mubr.f32.vlgmr.msra.gmra.mrb[0].mxu1 %v373_v45 }
  0xc0   : > { %v361_v48 = vpop.permute.xlu0 %360  ;;  %511 = vmatprep.mubr.f32.mxu0 %v1484_v6  ;;  %600 = vmatprep.mubr.f32.mxu1 %v1484_v6  ;;  %v371_v53 = vpop.permute.xlu1 %370 }
  0xc1   : > { %v374_v49 = vmul.f32 %v361_v48, %v346_v46  ;;  %v376_v54 = vmul.f32 %v371_v53, %v348_v52 }
  0xc3   : > { %512 = vmatmul.mubr.f32.gmra.mrb[2].mxu0 %v374_v49  ;;  %601 = vmatmul.mubr.f32.gmra.mrb[2].mxu1 %v374_v49 }
  0xc4   : > { %517 = vmatprep.mubr.f32.mxu0 %v1484_v6  ;;  %606 = vmatprep.mubr.f32.mxu1 %v1484_v6  ;;  %v1869_v60 = vpop.permute.xlu0 %945 }
  0xc5   : > { %vm956_vm7 = vcmp.eq.s32.totalorder %v1793_v32, %v1869_v60  ;;  %vm958_vm9 = vcmp.eq.s32.totalorder %v1813_v40, %v1869_v60  ;;  %vm957_vm13 = vcmp.eq.s32.totalorder %v1804_v36, %v1869_v60  ;;  %vm959_vm15 = vcmp.eq.s32.totalorder %v1815_v41, %v1869_v60 }
  0xc7   : > { %518 = vmatmul.mubr.f32.gmra.mrb[4].mxu0 %v375_v51  ;;  %607 = vmatmul.mubr.f32.gmra.mrb[4].mxu1 %v375_v51 }
  0xc8   : > { %523 = vmatprep.mubr.f32.mxu0 %v1484_v6  ;;  %612 = vmatprep.mubr.f32.mxu1 %v1484_v6  ;;  %v1753_v6 = vrot.slane %v619_v59, %v631_v58 }
  0xcb   : > { %524 = vmatmul.mubr.f32.gmra.mrb[6].mxu0 %v376_v54  ;;  %613 = vmatmul.mubr.f32.gmra.mrb[6].mxu1 %v376_v54 }
 0x192   : > { %v507_v1 = vpop.f32.mrb[0].mxu0  ;;  %v596_v2 = vpop.f32.mrb[0].mxu1 }
 0x193   : > { %v1760_v3 = vmul.f32 %v1751_v62, %v507_v1  ;;  %v1763_v4 = vmul.f32 %v1753_v6, %v596_v2  ;;  %v509_v5 = vpop.f32.mrb[1].mxu0  ;;  %v598_v7 = vpop.f32.mrb[1].mxu1 }
 0x194   : > { %v1766_v8 = vmul.f32 %v1755_v63, %v509_v5  ;;  %v1769_v9 = vmul.f32 %v1757_v0, %v598_v7 }
 0x195   : > { %v657_v11 = vmul.f32 %v1760_v3, %v1760_v3  ;;  %v659_v12 = vmul.f32 %v1763_v4, %v1763_v4  ;;  %v1796_v33 = vmul.f32 30.0, %v1760_v3  ;;  %v1800_v34 = vmul.f32 30.0, %v1763_v4 }
 0x196   : > { %v513_v13 = vpop.f32.mrb[2].mxu0  ;;  %v658_v15 = vmul.f32 %v1766_v8, %v1766_v8  ;;  %v602_v16 = vpop.f32.mrb[2].mxu1  ;;  %v660_v19 = vmul.f32 %v1769_v9, %v1769_v9  ;;  %v1809_v38 = vmul.f32 30.0, %v1766_v8  ;;  %v1828_v46 = vmul.f32 26.327477, %v1760_v3 }
 0x197   : > { %v673_v14 = vsub.f32 1.0, %v657_v11  ;;  %v515_v17 = vpop.f32.mrb[3].mxu0  ;;  %v675_v18 = vsub.f32 1.0, %v659_v12  ;;  %v604_v20 = vpop.f32.mrb[3].mxu1  ;;  %v1818_v42 = vmul.f32 %v1751_v62, %v513_v13  ;;  %v1821_v43 = vmul.f32 %v1753_v6, %v602_v16 }
 0x198   : > { %v674_v24 = vsub.f32 1.0, %v658_v15  ;;  %v676_v28 = vsub.f32 1.0, %v660_v19  ;;  %v1831_v47 = vmul.f32 26.327477, %v1763_v4  ;;  %v1835_v48 = vmul.f32 %v1755_v63, %v515_v17 }
 0x199   : > { %v1782_v23 = vmax.f32 %v673_v14, 0.0  ;;  %v1784_v27 = vmax.f32 %v675_v18, 0.0  ;;  %v1842_v51 = vadd.f32 -7.191383, %v1796_v33  ;;  %v1845_v52 = vadd.f32 -7.191383, %v1800_v34 }
 0x19a   : > { %v1786_v29 = vpop.f32.mrb[4].mxu0  ;;  %v1789_v30 = vpop.f32.mrb[4].mxu1  ;;  %v1806_v37 = vmax.f32 %v674_v24, 0.0  ;;  %v1811_v39 = vmax.f32 %v676_v28, 0.0  ;;  %v1849_v53 = vmul.f32 %v1757_v0, %v604_v20  ;;  %v1852_v54 = vmul.f32 26.327477, %v1766_v8 }
 0x19b   : > { %1333 = vrsqrt.f32 %v1782_v23  ;;  %v1791_v31 = vpop.f32.mrb[5].mxu0  ;;  %v1802_v35 = vpop.f32.mrb[5].mxu1  ;;  %v1855_v55 = vadd.f32 -7.191383, %v1809_v38  ;;  %v1858_v56 = vmul.f32 30.0, %v1769_v9  ;;  %v661_v57 = vmul.f32 %v1818_v42, %v1818_v42 }
 0x19c   : > { %1335 = vrsqrt.f32 %v1784_v27  ;;  %vm707_vm0 = vcmp.eq.f32.partialorder %v1782_v23, inf  ;;  %vm709_vm1 = vcmp.eq.f32.partialorder %v1782_v23, 0.0  ;;  %v1865_v58 = vmul.f32 26.327477, %v1769_v9 }
 0x19d   : > { %1337 = vrsqrt.f32 %v1806_v37  ;;  %v663_v59 = vmul.f32 %v1821_v43, %v1821_v43  ;;  %v710_v61 = vand.u32 2147483648, %v1782_v23  ;;  %vm721_vm2 = vcmp.eq.f32.partialorder %v1784_v27, inf }
 0x19e   : > { %v1823_v44 = vpop.f32.mrb[6].mxu0  ;;  %v1825_v45 = vpop.f32.mrb[6].mxu1  ;;  %1339 = vrsqrt.f32 %v1811_v39  ;;  %v677_v1 = vsub.f32 1.0, %v661_v57  ;;  %v662_v2 = vmul.f32 %v1835_v48, %v1835_v48  ;;  %vm723_vm3 = vcmp.eq.f32.partialorder %v1784_v27, 0.0 }
 0x19f   : > { %v1837_v49 = vpop.f32.mrb[7].mxu0  ;;  %v1839_v50 = vpop.f32.mrb[7].mxu1  ;;  %v724_v5 = vand.u32 2147483648, %v1784_v27  ;;  %v679_v7 = vsub.f32 1.0, %v663_v59  ;;  %v664_v10 = vmul.f32 %v1849_v53, %v1849_v53  ;;  %vm881_vm4 = vcmp.gt.f32.partialorder %v1760_v3, -0.87758255 }
 0x1a0   : > { %vm714_vm5 = vcmp.eq.f32.partialorder %v1806_v37, inf  ;;  %vm716_vm6 = vcmp.eq.f32.partialorder %v1806_v37, 0.0  ;;  %v1883_v12 = vadd.f32 -7.191383, %v1858_v56  ;;  %v1885_v13 = vmax.f32 %v677_v1, 0.0 }
 0x1a1   : > { %vm883_vm8 = vcmp.gt.f32.partialorder %v1763_v4, -0.87758255  ;;  %v717_v16 = vand.u32 2147483648, %v1806_v37  ;;  %v1892_v17 = vmax.f32 %v679_v7, 0.0  ;;  %v678_v18 = vsub.f32 1.0, %v662_v2 }
 0x1a2   : > { %vm728_vm10 = vcmp.eq.f32.partialorder %v1811_v39, inf  ;;  %1341 = vrsqrt.f32 %v1885_v13  ;;  %v680_v20 = vsub.f32 1.0, %v664_v10  ;;  %vm730_vm11 = vcmp.eq.f32.partialorder %v1811_v39, 0.0 }
 0x1a3   : > { %v731_v22 = vand.u32 2147483648, %v1811_v39  ;;  %1343 = vrsqrt.f32 %v1892_v17  ;;  %vm882_vm12 = vcmp.gt.f32.partialorder %v1766_v8, -0.87758255  ;;  %v1912_v28 = vmul.f32 30.0, %v1818_v42 }
 0x1a4   : > { %v1915_v57 = vmul.f32 26.327477, %v1818_v42  ;;  %vm884_vm14 = vcmp.gt.f32.partialorder %v1769_v9, -0.87758255  ;;  %v1924_v2 = vmax.f32 %v678_v18, 0.0 }
 0x1a5   : > { %v1334_v11 = vpop.eup %1333  ;;  %v1979_v4 = vmul.f32 26.327477, %v1835_v48 }
 0x1a6   : > { %v1336_v14 = vpop.eup %1335  ;;  %v706_v15 = vmul.f32 %v1334_v11, %v1782_v23  ;;  %v1930_v11 = vmul.f32 30.0, %v1821_v43  ;;  %1345 = vrsqrt.f32 %v1924_v2 }
 0x1a7   : > { %v720_v19 = vmul.f32 %v1336_v14, %v1784_v27  ;;  %v1338_v24 = vpop.eup %1337  ;;  %v1932_v14 = vmax.f32 %v680_v20, 0.0 }
 0x1a8   : > { %v708_v21 = vsel %vm707_vm0, %v1782_v23, %v706_v15  ;;  %v1340_v59 = vpop.eup %1339  ;;  %v1939_v15 = vmul.f32 26.327477, %v1821_v43  ;;  %vm735_vm0 = vcmp.eq.f32.partialorder %v1885_v13, inf }
 0x1a9   : > { %v711_v25 = vsel %vm709_vm1, %v710_v61, %v708_v21  ;;  %v722_v26 = vsel %vm721_vm2, %v1784_v27, %v720_v19  ;;  %v713_v61 = vmul.f32 %v1338_v24, %v1806_v37  ;;  %v727_v10 = vmul.f32 %v1340_v59, %v1811_v39 }
 0x1aa   : > { %v849_v1 = vmul.f32 14.382766, %v711_v25  ;;  %v725_v23 = vsel %vm723_vm3, %v724_v5, %v722_v26  ;;  %1347 = vrsqrt.f32 %v1932_v14  ;;  %vm737_vm1 = vcmp.eq.f32.partialorder %v1885_v13, 0.0 }
 0x1ab   : > { %v851_v7 = vmul.f32 14.382766, %v725_v23  ;;  %v715_v5 = vsel %vm714_vm5, %v1806_v37, %v713_v61  ;;  %v729_v20 = vsel %vm728_vm10, %v1811_v39, %v727_v10  ;;  %v1959_v37 = vpop.permute.xlu1 %948  ;;  %v738_v59 = vand.u32 2147483648, %v1885_v13 }
 0x1ac   : > { %v865_v27 = vsub.f32 %v1828_v46, %v849_v1  ;;  %v718_v19 = vsel %vm716_vm6, %v717_v16, %v715_v5  ;;  %v1949_v46 = vadd.f32 -7.191383, %v1912_v28  ;;  %v732_v25 = vsel %vm730_vm11, %v731_v22, %v729_v20 }
 0x1ad   : > { %v867_v18 = vsub.f32 %v1831_v47, %v851_v7  ;;  %v850_v24 = vmul.f32 14.382766, %v718_v19  ;;  %v1957_v47 = vmul.f32 30.0, %v1835_v48  ;;  %v852_v3 = vmul.f32 14.382766, %v732_v25 }
 0x1ae   : > { %v913_v21 = vsel %vm881_vm4, %v865_v27, %v1842_v51  ;;  %vm885_vm2 = vcmp.gt.f32.partialorder %v1818_v42, -0.87758255  ;;  %vm960_vm3 = vcmp.eq.s32.totalorder %v1793_v32, %v1959_v37  ;;  %vm749_vm4 = vcmp.eq.f32.partialorder %v1892_v17, inf }
 0x1af   : > { %v972_v16 = vsel %vm956_vm7, %v913_v21, %v1796_v33  ;;  %v915_v26 = vsel %vm883_vm8, %v867_v18, %v1845_v52  ;;  %v866_v51 = vsub.f32 %v1852_v54, %v850_v24  ;;  %v1179_v33 = vadd.f32 -7.191383, %v1930_v11  ;;  %v1342_v52 = vpop.eup %1341 }
 0x1b0   : > { %988 = vst [vmem:[%s1969_s24] sm:$0xff] %v972_v16  ;;  %v974_v39 = vsel %vm958_vm9, %v915_v26, %v1800_v34  ;;  %v868_v22 = vsub.f32 %v1865_v58, %v852_v3  ;;  %v1344_v34 = vpop.eup %1343  ;;  %v734_v58 = vmul.f32 %v1342_v52, %v1885_v13  ;;  %vm887_vm5 = vcmp.gt.f32.partialorder %v1821_v43, -0.87758255 }
 0x1b1   : > { %990 = vst [vmem:[%s1969_s24 + $0x10] sm:$0xff] %v974_v39  ;;  %v914_v54 = vsel %vm882_vm12, %v866_v51, %v1855_v55  ;;  %v1997_v1 = vmul.f32 %v1751_v62, %v1786_v29  ;;  %vm962_vm6 = vcmp.eq.s32.totalorder %v1813_v40, %v1959_v37  ;;  %v748_v23 = vmul.f32 %v1344_v34, %v1892_v17 }
 0x1b2   : > { %v973_v8 = vsel %vm957_vm13, %v914_v54, %v1809_v38  ;;  %v916_v55 = vsel %vm884_vm14, %v868_v22, %v1883_v12  ;;  %v2011_v61 = vmul.f32 %v1753_v6, %v1789_v30  ;;  %v736_v38 = vsel %vm735_vm0, %v1885_v13, %v734_v58 }
 0x1b3   : > { %989 = vst [vmem:[%s1969_s24 + $0x8] sm:$0xff] %v973_v8  ;;  %v975_v29 = vsel %vm959_vm15, %v916_v55, %v1858_v56  ;;  %v752_v7 = vand.u32 2147483648, %v1892_v17  ;;  %v665_v9 = vmul.f32 %v1997_v1, %v1997_v1  ;;  %v739_v30 = vsel %vm737_vm1, %v738_v59, %v736_v38  ;;  %v1346_v56 = vpop.eup %1345 }
 0x1b4   : > { %991 = vst [vmem:[%s1969_s24 + $0x18] sm:$0xff] %v975_v29  ;;  %v750_v12 = vsel %vm749_vm4, %v1892_v17, %v748_v23  ;;  %vm751_vm7 = vcmp.eq.f32.partialorder %v1892_v17, 0.0  ;;  %v1178_v60 = vadd.f32 -7.191383, %v1957_v47  ;;  %v853_v10 = vmul.f32 14.382766, %v739_v30  ;;  %v1348_v24 = vpop.eup %1347 }
 0x1b5   : > { %v753_v27 = vsel %vm751_vm7, %v752_v7, %v750_v12  ;;  %vm742_vm8 = vcmp.eq.f32.partialorder %v1924_v2, inf  ;;  %v681_v5 = vsub.f32 1.0, %v665_v9  ;;  %v741_v19 = vmul.f32 %v1346_v56, %v1924_v2 }
 0x1b6   : > { %v855_v18 = vmul.f32 14.382766, %v753_v27  ;;  %vm744_vm9 = vcmp.eq.f32.partialorder %v1924_v2, 0.0  ;;  %v667_v13 = vmul.f32 %v2011_v61, %v2011_v61  ;;  %v869_v20 = vsub.f32 %v1915_v57, %v853_v10 }
 0x1b7   : > { %v745_v17 = vand.u32 2147483648, %v1924_v2  ;;  %vm756_vm10 = vcmp.eq.f32.partialorder %v1932_v14, inf  ;;  %v697_v21 = vmax.f32 %v681_v5, 0.0  ;;  %v743_v16 = vsel %vm742_vm8, %v1924_v2, %v741_v19 }
 0x1b8   : > { %v871_v25 = vsub.f32 %v1939_v15, %v855_v18  ;;  %v683_v26 = vsub.f32 1.0, %v667_v13  ;;  %v2042_v3 = vmul.f32 %v1755_v63, %v1791_v31  ;;  %v917_v57 = vsel %vm885_vm2, %v869_v20, %v1949_v46 }
 0x1b9   : > { %v746_v39 = vsel %vm744_vm9, %v745_v17, %v743_v16  ;;  %v755_v51 = vmul.f32 %v1348_v24, %v1932_v14  ;;  %1349 = vrsqrt.f32 %v697_v21  ;;  %v976_v15 = vsel %vm960_vm3, %v917_v57, %v1912_v28 }
 0x1ba   : > { %v919_v2 = vsel %vm887_vm5, %v871_v25, %v1179_v33  ;;  %v854_v52 = vmul.f32 14.382766, %v746_v39  ;;  %v759_v31 = vand.u32 2147483648, %v1932_v14  ;;  %992 = vst [vmem:[%s1969_s24 + $0x20] sm:$0xff] %v976_v15  ;;  %vm758_vm11 = vcmp.eq.f32.partialorder %v1932_v14, 0.0 }
 0x1bb   : > { %v978_v42 = vsel %vm962_vm6, %v919_v2, %v1930_v11  ;;  %v757_v46 = vsel %vm756_vm10, %v1932_v14, %v755_v51  ;;  %v824_v28 = vmul.f32 30.0, %v1849_v53  ;;  %v699_v22 = vmax.f32 %v683_v26, 0.0 }
 0x1bc   : > { %994 = vst [vmem:[%s1969_s24 + $0x30] sm:$0xff] %v978_v42  ;;  %v870_v43 = vsub.f32 %v1979_v4, %v854_v52  ;;  %v760_v33 = vsel %vm758_vm11, %v759_v31, %v757_v46  ;;  %v666_v59 = vmul.f32 %v2042_v3, %v2042_v3  ;;  %vm886_vm12 = vcmp.gt.f32.partialorder %v1835_v48, -0.87758255 }
 0x1bd   : > { %v840_v11 = vmul.f32 26.327477, %v1849_v53  ;;  %v856_v34 = vmul.f32 14.382766, %v760_v33  ;;  %v2073_v54 = vmul.f32 %v1757_v0, %v1802_v35  ;;  %vm961_vm13 = vcmp.eq.s32.totalorder %v1804_v36, %v1959_v37 }
 0x1be   : > { %v918_v14 = vsel %vm886_vm12, %v870_v43, %v1178_v60  ;;  %1351 = vrsqrt.f32 %v699_v22  ;;  %v1180_v8 = vadd.f32 -7.191383, %v824_v28  ;;  %v682_v55 = vsub.f32 1.0, %v666_v59 }
 0x1bf   : > { %v977_v4 = vsel %vm961_vm13, %v918_v14, %v1957_v47  ;;  %v872_v58 = vsub.f32 %v840_v11, %v856_v34  ;;  %vm888_vm14 = vcmp.gt.f32.partialorder %v1849_v53, -0.87758255  ;;  %v668_v48 = vmul.f32 %v2073_v54, %v2073_v54  ;;  %v2092_v53 = vpop.permute.xlu0 %951 }
 0x1c0   : > { %993 = vst [vmem:[%s1969_s24 + $0x28] sm:$0xff] %v977_v4  ;;  %vm963_vm15 = vcmp.eq.s32.totalorder %v1815_v41, %v1959_v37  ;;  %v2084_v23 = vmax.f32 %v682_v55, 0.0  ;;  %v2088_v47 = vmul.f32 %v1751_v62, %v1823_v44  ;;  %v825_v30 = vmul.f32 30.0, %v1997_v1 }
 0x1c1   : > { %v920_v35 = vsel %vm888_vm14, %v872_v58, %v1180_v8  ;;  %v684_v38 = vsub.f32 1.0, %v668_v48  ;;  %vm763_vm0 = vcmp.eq.f32.partialorder %v697_v21, inf  ;;  %v766_v60 = vand.u32 2147483648, %v697_v21 }
 0x1c2   : > { %v979_v29 = vsel %vm963_vm15, %v920_v35, %v824_v28  ;;  %1353 = vrsqrt.f32 %v2084_v23  ;;  %v669_v37 = vmul.f32 %v2088_v47, %v2088_v47  ;;  %v2101_v62 = vmul.f32 %v1753_v6, %v1825_v45  ;;  %v2158_v35 = vpop.permute.xlu1 %954 }
 0x1c3   : > { %v1350_v7 = vpop.eup %1349  ;;  %995 = vst [vmem:[%s1969_s24 + $0x38] sm:$0xff] %v979_v29  ;;  %v2095_v12 = vmax.f32 %v684_v38, 0.0  ;;  %v2105_v44 = vmul.f32 %v1755_v63, %v1837_v49  ;;  %vm765_vm1 = vcmp.eq.f32.partialorder %v697_v21, 0.0  ;;  %vm964_vm2 = vcmp.eq.s32.totalorder %v1793_v32, %v2092_v53 }
 0x1c4   : > { %v762_v9 = vmul.f32 %v1350_v7, %v697_v21  ;;  %v841_v27 = vmul.f32 26.327477, %v1997_v1  ;;  %v685_v5 = vsub.f32 1.0, %v669_v37  ;;  %vm889_vm3 = vcmp.gt.f32.partialorder %v1997_v1, -0.87758255 }
 0x1c5   : > { %1355 = vrsqrt.f32 %v2095_v12  ;;  %v1181_v6 = vadd.f32 -7.191383, %v825_v30  ;;  %v671_v63 = vmul.f32 %v2101_v62, %v2101_v62  ;;  %vm966_vm4 = vcmp.eq.s32.totalorder %v1813_v40, %v2092_v53 }
 0x1c6   : > { %v764_v56 = vsel %vm763_vm0, %v697_v21, %v762_v9  ;;  %v827_v49 = vmul.f32 30.0, %v2011_v61  ;;  %v2117_v13 = vmax.f32 %v685_v5, 0.0  ;;  %v670_v20 = vmul.f32 %v2105_v44, %v2105_v44 }
 0x1c7   : > { %v767_v10 = vsel %vm765_vm1, %v766_v60, %v764_v56  ;;  %vm777_vm5 = vcmp.eq.f32.partialorder %v699_v22, inf  ;;  %v780_v21 = vand.u32 2147483648, %v699_v22  ;;  %v687_v24 = vsub.f32 1.0, %v671_v63 }
 0x1c8   : > { %v1352_v18 = vpop.eup %1351  ;;  %v857_v19 = vmul.f32 14.382766, %v767_v10  ;;  %vm779_vm6 = vcmp.eq.f32.partialorder %v699_v22, 0.0  ;;  %v843_v16 = vmul.f32 26.327477, %v2011_v61  ;;  %1357 = vrsqrt.f32 %v2117_v13 }
 0x1c9   : > { %v776_v45 = vmul.f32 %v1352_v18, %v699_v22  ;;  %vm891_vm7 = vcmp.gt.f32.partialorder %v2011_v61, -0.87758255  ;;  %v2126_v39 = vmax.f32 %v687_v24, 0.0  ;;  %v1183_v52 = vadd.f32 -7.191383, %v827_v49 }
 0x1ca   : > { %v873_v17 = vsub.f32 %v841_v27, %v857_v19  ;;  %v686_v31 = vsub.f32 1.0, %v670_v20  ;;  %vm965_vm8 = vcmp.eq.s32.totalorder %v1804_v36, %v2092_v53  ;;  %v826_v42 = vmul.f32 30.0, %v2042_v3 }
 0x1cb   : > { %v778_v25 = vsel %vm777_vm5, %v699_v22, %v776_v45  ;;  %v842_v46 = vmul.f32 26.327477, %v2042_v3  ;;  %1359 = vrsqrt.f32 %v2126_v39  ;;  %vm770_vm9 = vcmp.eq.f32.partialorder %v2084_v23, inf }
 0x1cc   : > { %v921_v26 = vsel %vm889_vm3, %v873_v17, %v1181_v6  ;;  %v781_v57 = vsel %vm779_vm6, %v780_v21, %v778_v25  ;;  %v1354_v51 = vpop.eup %1353  ;;  %v773_v43 = vand.u32 2147483648, %v2084_v23  ;;  %v2140_v33 = vmax.f32 %v686_v31, 0.0 }
 0x1cd   : > { %v980_v15 = vsel %vm964_vm2, %v921_v26, %v825_v30  ;;  %v859_v2 = vmul.f32 14.382766, %v781_v57  ;;  %v769_v1 = vmul.f32 %v1354_v51, %v2084_v23  ;;  %vm772_vm10 = vcmp.eq.f32.partialorder %v2084_v23, 0.0 }
 0x1ce   : > { %996 = vst [vmem:[%s1969_s24 + $0x40] sm:$0xff] %v980_v15  ;;  %v828_v11 = vmul.f32 30.0, %v2073_v54  ;;  %v2147_v34 = vmul.f32 %v1757_v0, %v1839_v50  ;;  %1361 = vrsqrt.f32 %v2140_v33  ;;  %vm784_vm11 = vcmp.eq.f32.partialorder %v2095_v12, inf }
 0x1cf   : > { %v875_v28 = vsub.f32 %v843_v16, %v859_v2  ;;  %v1356_v22 = vpop.eup %1355  ;;  %v771_v59 = vsel %vm770_vm9, %v2084_v23, %v769_v1  ;;  %v787_v48 = vand.u32 2147483648, %v2095_v12  ;;  %vm890_vm12 = vcmp.gt.f32.partialorder %v2042_v3, -0.87758255 }
 0x1d0   : > { %v774_v4 = vsel %vm772_vm10, %v773_v43, %v771_v59  ;;  %v783_v58 = vmul.f32 %v1356_v22, %v2095_v12  ;;  %vm786_vm13 = vcmp.eq.f32.partialorder %v2095_v12, 0.0  ;;  %v672_v50 = vmul.f32 %v2147_v34, %v2147_v34 }
 0x1d1   : > { %v923_v14 = vsel %vm891_vm7, %v875_v28, %v1183_v52  ;;  %v858_v55 = vmul.f32 14.382766, %v774_v4  ;;  %v1182_v23 = vadd.f32 -7.191383, %v826_v42  ;;  %v844_v38 = vmul.f32 26.327477, %v2073_v54 }
 0x1d2   : > { %v982_v8 = vsel %vm966_vm4, %v923_v14, %v827_v49  ;;  %v785_v0 = vsel %vm784_vm11, %v2095_v12, %v783_v58  ;;  %v1358_v7 = vpop.eup %1357  ;;  %vm967_vm14 = vcmp.eq.s32.totalorder %v1815_v41, %v2092_v53  ;;  %vm892_vm15 = vcmp.gt.f32.partialorder %v2073_v54, -0.87758255 }
 0x1d3   : > { %998 = vst [vmem:[%s1969_s24 + $0x50] sm:$0xff] %v982_v8  ;;  %v874_v61 = vsub.f32 %v842_v46, %v858_v55  ;;  %v788_v29 = vsel %vm786_vm13, %v787_v48, %v785_v0  ;;  %v688_v3 = vsub.f32 1.0, %v672_v50  ;;  %vm968_vm0 = vcmp.eq.s32.totalorder %v1793_v32, %v2158_v35 }
 0x1d4   : > { %v860_v9 = vmul.f32 14.382766, %v788_v29  ;;  %v1184_v12 = vadd.f32 -7.191383, %v828_v11  ;;  %v790_v37 = vmul.f32 %v1358_v7, %v2117_v13  ;;  %vm791_vm1 = vcmp.eq.f32.partialorder %v2117_v13, inf }
 0x1d5   : > { %v922_v30 = vsel %vm890_vm12, %v874_v61, %v1182_v23  ;;  %v794_v10 = vand.u32 2147483648, %v2117_v13  ;;  %v704_v27 = vmax.f32 %v688_v3, 0.0  ;;  %v1360_v5 = vpop.eup %1359  ;;  %vm793_vm2 = vcmp.eq.f32.partialorder %v2117_v13, 0.0 }
 0x1d6   : > { %v981_v60 = vsel %vm965_vm8, %v922_v30, %v826_v42  ;;  %v876_v56 = vsub.f32 %v844_v38, %v860_v9  ;;  %v792_v18 = vsel %vm791_vm1, %v2117_v13, %v790_v37  ;;  %v829_v19 = vmul.f32 30.0, %v2088_v47 }
 0x1d7   : > { %997 = vst [vmem:[%s1969_s24 + $0x48] sm:$0xff] %v981_v60  ;;  %v845_v6 = vmul.f32 26.327477, %v2088_v47  ;;  %v795_v45 = vsel %vm793_vm2, %v794_v10, %v792_v18  ;;  %v804_v49 = vmul.f32 %v1360_v5, %v2126_v39  ;;  %1363 = vrsqrt.f32 %v704_v27 }
 0x1d8   : > { %v924_v63 = vsel %vm892_vm15, %v876_v56, %v1184_v12  ;;  %v861_v17 = vmul.f32 14.382766, %v795_v45  ;;  %vm805_vm3 = vcmp.eq.f32.partialorder %v2126_v39, inf  ;;  %v808_v13 = vand.u32 2147483648, %v2126_v39  ;;  %v1362_v21 = vpop.eup %1361 }
 0x1d9   : > { %v983_v20 = vsel %vm967_vm14, %v924_v63, %v828_v11  ;;  %vm893_vm4 = vcmp.gt.f32.partialorder %v2088_v47, -0.87758255  ;;  %v806_v54 = vsel %vm805_vm3, %v2126_v39, %v804_v49  ;;  %vm807_vm5 = vcmp.eq.f32.partialorder %v2126_v39, 0.0 }
 0x1da   : > { %999 = vst [vmem:[%s1969_s24 + $0x58] sm:$0xff] %v983_v20  ;;  %v831_v24 = vmul.f32 30.0, %v2101_v62  ;;  %v877_v25 = vsub.f32 %v845_v6, %v861_v17  ;;  %v1185_v16 = vadd.f32 -7.191383, %v829_v19  ;;  %v809_v53 = vsel %vm807_vm5, %v808_v13, %v806_v54 }
 0x1db   : > { %v797_v26 = vmul.f32 %v1362_v21, %v2140_v33  ;;  %v847_v57 = vmul.f32 26.327477, %v2101_v62  ;;  %v863_v51 = vmul.f32 14.382766, %v809_v53  ;;  %vm798_vm6 = vcmp.eq.f32.partialorder %v2140_v33, inf }
 0x1dc   : > { %v801_v15 = vand.u32 2147483648, %v2140_v33  ;;  %v925_v47 = vsel %vm893_vm4, %v877_v25, %v1185_v16  ;;  %vm800_vm7 = vcmp.eq.f32.partialorder %v2140_v33, 0.0  ;;  %v830_v39 = vmul.f32 30.0, %v2105_v44 }
 0x1dd   : > { %v799_v2 = vsel %vm798_vm6, %v2140_v33, %v797_v26  ;;  %v984_v52 = vsel %vm968_vm0, %v925_v47, %v829_v19  ;;  %v879_v31 = vsub.f32 %v847_v57, %v863_v51  ;;  %v1187_v1 = vadd.f32 -7.191383, %v831_v24 }
 0x1de   : > { %v802_v42 = vsel %vm800_vm7, %v801_v15, %v799_v2  ;;  %1000 = vst [vmem:[%s1969_s24 + $0x60] sm:$0xff] %v984_v52  ;;  %vm895_vm8 = vcmp.gt.f32.partialorder %v2101_v62, -0.87758255  ;;  %v846_v46 = vmul.f32 26.327477, %v2105_v44  ;;  %vm970_vm9 = vcmp.eq.s32.totalorder %v1813_v40, %v2158_v35 }
 0x1df   : > { %v862_v28 = vmul.f32 14.382766, %v802_v42  ;;  %v927_v43 = vsel %vm895_vm8, %v879_v31, %v1187_v1  ;;  %v1186_v59 = vadd.f32 -7.191383, %v830_v39  ;;  %vm894_vm10 = vcmp.gt.f32.partialorder %v2105_v44, -0.87758255 }
 0x1e0   : > { %v986_v33 = vsel %vm970_vm9, %v927_v43, %v831_v24  ;;  %vm969_vm11 = vcmp.eq.s32.totalorder %v1804_v36, %v2158_v35  ;;  %vm812_vm12 = vcmp.eq.f32.partialorder %v704_v27, inf  ;;  %v815_v4 = vand.u32 2147483648, %v704_v27 }
 0x1e1   : > { %v878_v22 = vsub.f32 %v846_v46, %v862_v28  ;;  %v1364_v11 = vpop.eup %1363  ;;  %1002 = vst [vmem:[%s1969_s24 + $0x70] sm:$0xff] %v986_v33  ;;  %vm814_vm13 = vcmp.eq.f32.partialorder %v704_v27, 0.0  ;;  %v832_v58 = vmul.f32 30.0, %v2147_v34  ;;  %v848_v55 = vmul.f32 26.327477, %v2147_v34 }
 0x1e2   : > { %v811_v62 = vmul.f32 %v1364_v11, %v704_v27  ;;  %vm896_vm14 = vcmp.gt.f32.partialorder %v2147_v34, -0.87758255  ;;  %vm971_vm15 = vcmp.eq.s32.totalorder %v1815_v41, %v2158_v35 }
 0x1e3   : > { %v926_v32 = vsel %vm894_vm10, %v878_v22, %v1186_v59  ;;  %v1188_v48 = vadd.f32 -7.191383, %v832_v58 }
 0x1e4   : > { %v985_v14 = vsel %vm969_vm11, %v926_v32, %v830_v39  ;;  %v813_v40 = vsel %vm812_vm12, %v704_v27, %v811_v62 }
 0x1e5   : > { %1001 = vst [vmem:[%s1969_s24 + $0x68] sm:$0xff] %v985_v14  ;;  %v816_v8 = vsel %vm814_vm13, %v815_v4, %v813_v40 }
 0x1e6   : > { %v864_v44 = vmul.f32 14.382766, %v816_v8 }
 0x1e8   : > { %v880_v36 = vsub.f32 %v848_v55, %v864_v44 }
 0x1ea   : > { %v928_v0 = vsel %vm896_vm14, %v880_v36, %v1188_v48 }
 0x1eb   : > { %v987_v50 = vsel %vm971_vm15, %v928_v0, %v832_v58 }
 0x1ec   : > { %1003 = vst [vmem:[%s1969_s24 + $0x78] sm:$0xff] %v987_v50 }
 0x1ed   : > { %1408 = shalt.err (!%p1405_p4)
}
 0x1ee   : > { %s1409_s10 = scalar_lea.hbm %s2224_s9, 2048  ;;  %s1413_s16 = scalar_lea.hbm %s2284_s5, 4096 }
 0x1ef   : > { %p1410_p6 = scmp.ne.s32.totalorder %s2224_s9, %s1409_s10  ;;  %p1414_p2 = scmp.lt.u32.totalorder %s2224_s9, %s2284_s5 }
 0x1f0   : > { %p1415_p5 = scmp.lt.u32.totalorder %s1413_s16, %s1409_s10  ;;  %p1417_p9 = scmp.lt.u32.totalorder %s1409_s10, %s2224_s9 }
 0x1f1   : > { %p1411_p7 = pnand %p1410_p6, %p2291_p11 }
 0x1f2   : > { %p1416_p8 = por %p1415_p5, %p1414_p2 }
 0x1f3   : > { %p1412_p12 = pneg %p1411_p7 }
 0x1f4   : > { %p1418_p0 = por %p1417_p9, %p1416_p8 }
 0x1f6   : > { %p1419_p10 = pnand %p1418_p0, %p1412_p12 }
 0x1f8   : > { %1422 = shalt.err (!%p1419_p10)
}
 0x1f9   : > { %s1486_s12 = smov 512   ;;  %s1487_s13 = smov 1024  }
 0x1fa   : > { %s1488_s15 = smov 32  }
 0x1fb   : > { %1263 = dma.vmem_to_hbm [thread:$0]  (%p2291_p11), %s2227_s30, 2048, %s2224_s9, %s1005_s21, %s1486_s12, %s1487_s13, %s1488_s15  }
 0x1fc PF: > { %s1036_s25 = sand.u32 1, %s1457_s18   ;;  %p2292_p13 = scmp.ne.s32.totalorder %s2289_s8, 0 }
 0x1fd   : > { %p2293_p1 = scmp.ge.s32.totalorder %s1477_s23, 2  ;;  %s1037_s27 = scalar_lea.sflag [#allocation4], %s1036_s25 }
 0x1ff   : > { %p1270_p3 = pnand %p2293_p1, %p2292_p13 }
 0x201   : > { %1452 = dma.done.wait (!%p1270_p3), %s1037_s27, 2048  }
 0x202   : > { %1454 = vsyncadd (!%p1270_p3), %s1037_s27, 4294965248  ;;  %s21_s23 = sadd.s32 1, %s1477_s23   ;;  %s2294_s18 = smov %s1461_s19 }
 0x203   : > { %p18_p4 = scmp.ge.s32.totalorder %s21_s23, 4   ;;  %s2295_s19 = smov %s1465_s20 }
 0x204   : > { %s2296_s20 = smov %s1575_s7  ;;  %s2297_s21 = smov %s1473_s22 }
 0x205   : > { %s2298_s22 = smov %s2300_s26  ;;  %20 = sbr.rel (!%p18_p4) target bundleno = 6 (0x6), region = 97 }
 0x20c   :  { %1042 = vsyncpa [#allocation3], 1 }
 0x20d   :  { %1044 = vsyncpa [#allocation3 + $0x1], 1 }
 0x20e   :  { %1045 = vsyncpa [#allocation4], 1 }
 0x20f   :  { %1047 = vsyncpa [#allocation4 + $0x1], 1 }

</bundles_post_ra>
